<compile_context>
chip_gen: v5e
topology: v5e:2x2
jax: 0.10.0
libtpu: 0.0.40
codegen_flags: <defaults>
</compile_context>

<pallas_src>
import functools

import jax
import jax.numpy as jnp
from jax import lax
from jax.experimental import pallas as pl
from jax.experimental.pallas import tpu as pltpu


def _round_up(x, m):
    return (x + m - 1) // m * m


def _logits_lse_kernel(zu_ref, v_ref, logits_ref, lse_ref, m_ref, l_ref,
                       *, n_valid, tile_n, need_mask):
    """One item tile: logits = Zu @ V_tile^T ; online log-sum-exp update."""
    n = pl.program_id(0)

    @pl.when(n == 0)
    def _():
        m_ref[...] = jnp.full_like(m_ref, -jnp.inf)
        l_ref[...] = jnp.zeros_like(l_ref)

    # (B_pad, TN) <- (B_pad, F) x (TN, F), contraction over F (no explicit .T).
    logits = lax.dot_general(
        zu_ref[...], v_ref[...],
        dimension_numbers=(((1,), (1,)), ((), ())),
        preferred_element_type=jnp.float32)

    if need_mask:
        col = n * tile_n + lax.broadcasted_iota(jnp.int32, logits.shape, 1)
        logits = jnp.where(col < n_valid, logits, -jnp.inf)

    m_prev = m_ref[...]
    m_new = jnp.maximum(m_prev, jnp.max(logits, axis=1, keepdims=True))
    alpha = jnp.exp(m_prev - m_new)
    l_ref[...] = alpha * l_ref[...] + jnp.sum(jnp.exp(logits - m_new),
                                              axis=1, keepdims=True)
    m_ref[...] = m_new
    logits_ref[...] = logits                       # raw logits, finalized later

    @pl.when(n == pl.num_programs(0) - 1)
    def _():
        lse_ref[...] = m_ref[...] + jnp.log(l_ref[...])


def _finalize_kernel(logits_ref, lse_ref, out_ref):
    out_ref[...] = logits_ref[...] - lse_ref[...]


@functools.partial(jax.jit,
                   static_argnames=("add_noise", "side_info", "use_bf16", "block_n"))
def vlm_forward_pallas(user_ids, params, noise_key, *,
                       add_noise=True, side_info=True,
                       use_bf16=True, block_n=512):
    """Returns (log_softmax, Mu_Zu_batch, lsdev_Zu_batch) like VLM_PyTorch.forward."""
    mu_zu_batch = params["Mu_Zu"][user_ids]          # (B, F)
    lsdev_batch = params["lsdev_Zu"][user_ids]       # (B, 1)
    B, F = mu_zu_batch.shape
    N = params["Mu_Zv"].shape[0]

    # Reparameterization (tiny, batch-side). Specialized away when add_noise=False.
    if add_noise:
        eps = jax.random.normal(noise_key, (B, F), dtype=jnp.float32)
        zu = mu_zu_batch + eps * jnp.exp(lsdev_batch)
    else:
        zu = mu_zu_batch

    # Batch-independent side-info term, hoisted out of the hot loop. Skipped entirely
    # when side_info=False (no zeros DMA, no zeros matmul).
    v_eff = params["Mu_Zv"]
    if side_info:
        # TODO(synk): sparse COO item_tag_mat is represented densely here.
        v_eff = v_eff + jnp.dot(params["item_tag_mat"], params["Mu_Zt"],
                                preferred_element_type=jnp.float32)

    compute_dtype = jnp.bfloat16 if use_bf16 else jnp.float32
    zu_c = zu.astype(compute_dtype)
    v_c = v_eff.astype(compute_dtype)

    # Pad B to 8 sublanes, N to a multiple of the lane-dense item tile (mult. of 128).
    B_pad = _round_up(B, 8)
    tile_n = min(int(block_n), _round_up(N, 128))
    N_pad = _round_up(N, tile_n)
    if B_pad != B:
        zu_c = jnp.pad(zu_c, ((0, B_pad - B), (0, 0)))
    if N_pad != N:
        v_c = jnp.pad(v_c, ((0, N_pad - N), (0, 0)))
    num_tiles = N_pad // tile_n

    kernel = functools.partial(_logits_lse_kernel, n_valid=N, tile_n=tile_n,
                               need_mask=(N_pad != N))
    logits_pad, lse = pl.pallas_call(
        kernel,
        grid=(num_tiles,),
        in_specs=[
            pl.BlockSpec((B_pad, F), lambda n: (0, 0)),       # Zu resident in VMEM
            pl.BlockSpec((tile_n, F), lambda n: (n, 0)),      # V_eff streamed tiles
        ],
        out_specs=[
            pl.BlockSpec((B_pad, tile_n), lambda n: (0, n)),  # lane-dense raw logits
            pl.BlockSpec((B_pad, 1), lambda n: (0, 0)),       # lse (resident, last tile)
        ],
        out_shape=(
            jax.ShapeDtypeStruct((B_pad, N_pad), jnp.float32),
            jax.ShapeDtypeStruct((B_pad, 1), jnp.float32),
        ),
        scratch_shapes=[
            pltpu.VMEM((B_pad, 1), jnp.float32),   # running max  m
            pltpu.VMEM((B_pad, 1), jnp.float32),   # running sum  l
        ],
        compiler_params=pltpu.CompilerParams(
            dimension_semantics=("arbitrary",),        # softmax carry over item tiles
            vmem_limit_bytes=32 * 1024 * 1024),        # safe on v5e/v6e/v7x
    )(zu_c, v_c)

    # Finalize log_softmax in place (logits buffer aliased into the output).
    log_probs_pad = pl.pallas_call(
        _finalize_kernel,
        grid=(num_tiles,),
        in_specs=[
            pl.BlockSpec((B_pad, tile_n), lambda n: (0, n)),
            pl.BlockSpec((B_pad, 1), lambda n: (0, 0)),
        ],
        out_specs=pl.BlockSpec((B_pad, tile_n), lambda n: (0, n)),
        out_shape=jax.ShapeDtypeStruct((B_pad, N_pad), jnp.float32),
        input_output_aliases={0: 0},
        compiler_params=pltpu.CompilerParams(
            dimension_semantics=("parallel",),
            vmem_limit_bytes=32 * 1024 * 1024),
    )(logits_pad, lse)

    log_softmax = log_probs_pad[:B, :N]
    return log_softmax, mu_zu_batch, lsdev_batch


def vlm_forward_ref(user_ids, params, eps, *, side_info=True,
                    compute_dtype=jnp.float32):
    """Pure-JAX reference replicating the PyTorch forward (same eps / precision)."""
    mu_zu_batch = params["Mu_Zu"][user_ids]
    lsdev_batch = params["lsdev_Zu"][user_ids]
    zu = mu_zu_batch + eps * jnp.exp(lsdev_batch)
    v_eff = params["Mu_Zv"]
    if side_info:
        v_eff = v_eff + params["item_tag_mat"] @ params["Mu_Zt"]
    zu = zu.astype(compute_dtype).astype(jnp.float32)
    v_eff = v_eff.astype(compute_dtype).astype(jnp.float32)
    logits = zu @ v_eff.T
    return jax.nn.log_softmax(logits, axis=1)


if __name__ == "__main__":
    # Small synthetic config; num_items and B deliberately NOT aligned so the
    # padding / in-kernel masking paths are exercised.
    num_users, num_items, num_tags, num_factors = 16, 200, 8, 32
    B = 5

    key = jax.random.PRNGKey(0)
    k_zu, k_ls, k_zv, k_zt, k_tag, k_noise = jax.random.split(key, 6)

    params = {
        "Mu_Zu": jax.random.normal(k_zu, (num_users, num_factors), jnp.float32),
        "lsdev_Zu": jax.random.normal(k_ls, (num_users, 1), jnp.float32) * 0.1,
        "Mu_Zv": jax.random.normal(k_zv, (num_items, num_factors), jnp.float32),
        "Mu_Zt": jax.random.normal(k_zt, (num_tags, num_factors), jnp.float32),
        "item_tag_mat": (jax.random.uniform(k_tag, (num_items, num_tags)) > 0.7
                         ).astype(jnp.float32),
    }
    user_ids = jnp.arange(B, dtype=jnp.int32) % num_users

    # 1) bf16-streamed operands, noise + side info; block_n=128 -> 2 item tiles,
    #    exercising the multi-tile online log-softmax and the tail mask (200 < 256).
    log_sm, mu_zu_b, lsdev_b = vlm_forward_pallas(
        user_ids, params, k_noise, add_noise=True, side_info=True,
        use_bf16=True, block_n=128)
    jax.block_until_ready((log_sm, mu_zu_b, lsdev_b))
    assert log_sm.shape == (B, num_items)

    eps = jax.random.normal(k_noise, (B, num_factors), dtype=jnp.float32)
    ref_bf16 = vlm_forward_ref(user_ids, params, eps, side_info=True,
                               compute_dtype=jnp.bfloat16)
    assert jnp.allclose(log_sm, ref_bf16, atol=1e-3, rtol=1e-3), "bf16 path mismatch"

    # 2) f32 path, no noise (eps specialized away), with side info.
    log_sm2, _, _ = vlm_forward_pallas(
        user_ids, params, k_noise, add_noise=False, side_info=True,
        use_bf16=False, block_n=128)
    jax.block_until_ready(log_sm2)
    ref2 = vlm_forward_ref(user_ids, params,
                           jnp.zeros((B, num_factors), jnp.float32), side_info=True)
    assert jnp.allclose(log_sm2, ref2, atol=1e-4, rtol=1e-4), "f32 no-noise mismatch"

    # 3) side_info disabled path (tag matmul specialized away at trace time).
    log_sm3, _, _ = vlm_forward_pallas(
        user_ids, params, k_noise, add_noise=False, side_info=False,
        use_bf16=False, block_n=128)
    jax.block_until_ready(log_sm3)
    ref3 = vlm_forward_ref(user_ids, params,
                           jnp.zeros((B, num_factors), jnp.float32), side_info=False)
    assert jnp.allclose(log_sm3, ref3, atol=1e-4, rtol=1e-4), "side_info=False mismatch"

    print("KERNEL_OK")
</pallas_src>

<mosaic_0001>
module attributes {stable_mosaic.version = 11 : i64} {
  func.func @_finalize_kernel(%arg0: i32, %arg1: memref<8x128xf32, #tpu.memory_space<vmem>>, %arg2: memref<8x1xf32, #tpu.memory_space<vmem>>, %arg3: memref<8x128xf32, #tpu.memory_space<vmem>>) attributes {dimension_semantics = [#tpu.dimension_semantics<parallel>], iteration_bounds = array<i64: 2>, scalar_prefetch = 0 : i64, scratch_operands = 0 : i64, tpu.core_type = #tpu.core_type<tc>, window_params = [{transform_indices = @transform_0, window_bounds = array<i64: 8, 128>}, {pipeline_mode = #tpu.pipeline_mode<synchronous>, transform_indices = @transform_1, window_bounds = array<i64: 8, 1>}, {transform_indices = @transform_2, window_bounds = array<i64: 8, 128>}]} {
    %c0 = arith.constant 0 : index
    %c0_0 = arith.constant 0 : index
    %0 = vector.load %arg1[%c0, %c0_0] : memref<8x128xf32, #tpu.memory_space<vmem>>, vector<8x128xf32>
    %c0_1 = arith.constant 0 : index
    %c0_2 = arith.constant 0 : index
    %1 = vector.load %arg2[%c0_1, %c0_2] : memref<8x1xf32, #tpu.memory_space<vmem>>, vector<8x1xf32>
    %2 = vector.broadcast %1 : vector<8x1xf32> to vector<8x128xf32>
    %3 = arith.subf %0, %2 : vector<8x128xf32>
    %c0_3 = arith.constant 0 : index
    %c0_4 = arith.constant 0 : index
    %4 = vector.load %arg3[%c0_3, %c0_4] : memref<8x128xf32, #tpu.memory_space<vmem>>, vector<8x128xf32>
    tpu.vector_store %arg3[%c0_3, %c0_4], %3 {strides = array<i32>} : memref<8x128xf32, #tpu.memory_space<vmem>>, vector<8x128xf32>,
    return
  }
  func.func @transform_0(%arg0: i32) -> (i32, i32) {
    %c0_i32 = arith.constant 0 : i32
    %c0_i32_0 = arith.constant 0 : i32
    return %c0_i32, %arg0 : i32, i32
  }
  func.func @transform_1(%arg0: i32) -> (i32, i32) {
    %c0_i32 = arith.constant 0 : i32
    %c0_i32_0 = arith.constant 0 : i32
    %c0_i32_1 = arith.constant 0 : i32
    return %c0_i32, %c0_i32_0 : i32, i32
  }
  func.func @transform_2(%arg0: i32) -> (i32, i32) {
    %c0_i32 = arith.constant 0 : i32
    %c0_i32_0 = arith.constant 0 : i32
    return %c0_i32, %arg0 : i32, i32
  }
}

module attributes {stable_mosaic.version = 11 : i64} {
  func.func @_logits_lse_kernel(%arg0: i32, %arg1: memref<8x32xbf16, #tpu.memory_space<vmem>>, %arg2: memref<128x32xbf16, #tpu.memory_space<vmem>>, %arg3: memref<8x128xf32, #tpu.memory_space<vmem>>, %arg4: memref<8x1xf32, #tpu.memory_space<vmem>>, %arg5: memref<8x1xf32, #tpu.memory_space<vmem>>, %arg6: memref<8x1xf32, #tpu.memory_space<vmem>>) attributes {dimension_semantics = [#tpu.dimension_semantics<arbitrary>], iteration_bounds = array<i64: 2>, scalar_prefetch = 0 : i64, scratch_operands = 2 : i64, tpu.core_type = #tpu.core_type<tc>, window_params = [{pipeline_mode = #tpu.pipeline_mode<synchronous>, transform_indices = @transform_0, window_bounds = array<i64: 8, 32>}, {transform_indices = @transform_1, window_bounds = array<i64: 128, 32>}, {transform_indices = @transform_2, window_bounds = array<i64: 8, 128>}, {pipeline_mode = #tpu.pipeline_mode<synchronous>, transform_indices = @transform_3, window_bounds = array<i64: 8, 1>}]} {
    %c0_i32 = arith.constant 0 : i32
    %0 = arith.cmpi eq, %arg0, %c0_i32 : i32
    %1 = arith.extui %0 : i1 to i32
    %c0_i32_0 = arith.constant 0 : i32
    %2 = arith.cmpi ne, %1, %c0_i32_0 : i32
    scf.if %2 {
      %cst_18 = arith.constant 0xFF800000 : f32
      %34 = vector.broadcast %cst_18 : f32 to vector<8x1xf32>
      %c0_19 = arith.constant 0 : index
      %c0_20 = arith.constant 0 : index
      %35 = vector.load %arg5[%c0_19, %c0_20] : memref<8x1xf32, #tpu.memory_space<vmem>>, vector<8x1xf32>
      tpu.vector_store %arg5[%c0_19, %c0_20], %34 {strides = array<i32>} : memref<8x1xf32, #tpu.memory_space<vmem>>, vector<8x1xf32>,
      %cst_21 = arith.constant 0.000000e+00 : f32
      %36 = vector.broadcast %cst_21 : f32 to vector<8x1xf32>
      %c0_22 = arith.constant 0 : index
      %c0_23 = arith.constant 0 : index
      %37 = vector.load %arg6[%c0_22, %c0_23] : memref<8x1xf32, #tpu.memory_space<vmem>>, vector<8x1xf32>
      tpu.vector_store %arg6[%c0_22, %c0_23], %36 {strides = array<i32>} : memref<8x1xf32, #tpu.memory_space<vmem>>, vector<8x1xf32>,
    } else {
    }
    %c0 = arith.constant 0 : index
    %c0_1 = arith.constant 0 : index
    %3 = vector.load %arg1[%c0, %c0_1] : memref<8x32xbf16, #tpu.memory_space<vmem>>, vector<8x32xbf16>
    %c0_2 = arith.constant 0 : index
    %c0_3 = arith.constant 0 : index
    %4 = vector.load %arg2[%c0_2, %c0_3] : memref<128x32xbf16, #tpu.memory_space<vmem>>, vector<128x32xbf16>
    %cst = arith.constant dense<0.000000e+00> : vector<8x128xf32>
    %5 = tpu.matmul %3, %4, %cst {dimension_numbers = #tpu.dot_dimension_numbers<[1], [1], [0], [0], [0, 0, 1, 0], [], []>} : vector<8x32xbf16>, vector<128x32xbf16>, vector<8x128xf32> -> vector<8x128xf32>
    %c128_i32 = arith.constant 128 : i32
    %6 = arith.muli %arg0, %c128_i32 : i32
    %7 = tpu.iota {dimensions = array<i32: 1>} : vector<8x128xi32>
    %8 = vector.broadcast %6 : i32 to vector<8x128xi32>
    %9 = arith.addi %8, %7 : vector<8x128xi32>
    %c200_i32 = arith.constant 200 : i32
    %10 = vector.broadcast %c200_i32 : i32 to vector<8x128xi32>
    %11 = arith.cmpi slt, %9, %10 : vector<8x128xi32>
    %cst_4 = arith.constant 0xFF800000 : f32
    %12 = vector.broadcast %cst_4 : f32 to vector<8x128xf32>
    %13 = arith.select %11, %5, %12 : vector<8x128xi1>, vector<8x128xf32>
    %c0_5 = arith.constant 0 : index
    %c0_6 = arith.constant 0 : index
    %14 = vector.load %arg5[%c0_5, %c0_6] : memref<8x1xf32, #tpu.memory_space<vmem>>, vector<8x1xf32>
    %cst_7 = arith.constant dense<0xFF800000> : vector<8xf32>
    %15 = vector.multi_reduction <maximumf>, %13, %cst_7 [1] : vector<8x128xf32> to vector<8xf32>
    %16 = vector.shape_cast %15 : vector<8xf32> to vector<8x1xf32>
    %17 = arith.maximumf %14, %16 : vector<8x1xf32>
    %18 = arith.subf %14, %17 : vector<8x1xf32>
    %19 = math.exp %18 : vector<8x1xf32>
    %c0_8 = arith.constant 0 : index
    %c0_9 = arith.constant 0 : index
    %20 = vector.load %arg6[%c0_8, %c0_9] : memref<8x1xf32, #tpu.memory_space<vmem>>, vector<8x1xf32>
    %21 = arith.mulf %19, %20 : vector<8x1xf32>
    %22 = vector.broadcast %17 : vector<8x1xf32> to vector<8x128xf32>
    %23 = arith.subf %13, %22 : vector<8x128xf32>
    %24 = math.exp %23 : vector<8x128xf32>
    %cst_10 = arith.constant dense<0.000000e+00> : vector<8xf32>
    %25 = vector.multi_reduction <add>, %24, %cst_10 [1] : vector<8x128xf32> to vector<8xf32>
    %26 = vector.shape_cast %25 : vector<8xf32> to vector<8x1xf32>
    %27 = arith.addf %21, %26 : vector<8x1xf32>
    %c0_11 = arith.constant 0 : index
    %c0_12 = arith.constant 0 : index
    %28 = vector.load %arg6[%c0_11, %c0_12] : memref<8x1xf32, #tpu.memory_space<vmem>>, vector<8x1xf32>
    tpu.vector_store %arg6[%c0_11, %c0_12], %27 {strides = array<i32>} : memref<8x1xf32, #tpu.memory_space<vmem>>, vector<8x1xf32>,
    %c0_13 = arith.constant 0 : index
    %c0_14 = arith.constant 0 : index
    %29 = vector.load %arg5[%c0_13, %c0_14] : memref<8x1xf32, #tpu.memory_space<vmem>>, vector<8x1xf32>
    tpu.vector_store %arg5[%c0_13, %c0_14], %17 {strides = array<i32>} : memref<8x1xf32, #tpu.memory_space<vmem>>, vector<8x1xf32>,
    %c0_15 = arith.constant 0 : index
    %c0_16 = arith.constant 0 : index
    %30 = vector.load %arg3[%c0_15, %c0_16] : memref<8x128xf32, #tpu.memory_space<vmem>>, vector<8x128xf32>
    tpu.vector_store %arg3[%c0_15, %c0_16], %13 {strides = array<i32>} : memref<8x128xf32, #tpu.memory_space<vmem>>, vector<8x128xf32>,
    %c1_i32 = arith.constant 1 : i32
    %31 = arith.cmpi eq, %arg0, %c1_i32 : i32
    %32 = arith.extui %31 : i1 to i32
    %c0_i32_17 = arith.constant 0 : i32
    %33 = arith.cmpi ne, %32, %c0_i32_17 : i32
    scf.if %33 {
      %c0_18 = arith.constant 0 : index
      %c0_19 = arith.constant 0 : index
      %34 = vector.load %arg5[%c0_18, %c0_19] : memref<8x1xf32, #tpu.memory_space<vmem>>, vector<8x1xf32>
      %c0_20 = arith.constant 0 : index
      %c0_21 = arith.constant 0 : index
      %35 = vector.load %arg6[%c0_20, %c0_21] : memref<8x1xf32, #tpu.memory_space<vmem>>, vector<8x1xf32>
      %36 = math.log %35 : vector<8x1xf32>
      %37 = arith.addf %34, %36 : vector<8x1xf32>
      %c0_22 = arith.constant 0 : index
      %c0_23 = arith.constant 0 : index
      %38 = vector.load %arg4[%c0_22, %c0_23] : memref<8x1xf32, #tpu.memory_space<vmem>>, vector<8x1xf32>
      tpu.vector_store %arg4[%c0_22, %c0_23], %37 {strides = array<i32>} : memref<8x1xf32, #tpu.memory_space<vmem>>, vector<8x1xf32>,
    } else {
    }
    return
  }
  func.func @transform_0(%arg0: i32) -> (i32, i32) {
    %c0_i32 = arith.constant 0 : i32
    %c0_i32_0 = arith.constant 0 : i32
    %c0_i32_1 = arith.constant 0 : i32
    return %c0_i32, %c0_i32_0 : i32, i32
  }
  func.func @transform_1(%arg0: i32) -> (i32, i32) {
    %c0_i32 = arith.constant 0 : i32
    %c0_i32_0 = arith.constant 0 : i32
    return %arg0, %c0_i32 : i32, i32
  }
  func.func @transform_2(%arg0: i32) -> (i32, i32) {
    %c0_i32 = arith.constant 0 : i32
    %c0_i32_0 = arith.constant 0 : i32
    return %c0_i32, %arg0 : i32, i32
  }
  func.func @transform_3(%arg0: i32) -> (i32, i32) {
    %c0_i32 = arith.constant 0 : i32
    %c0_i32_0 = arith.constant 0 : i32
    %c0_i32_1 = arith.constant 0 : i32
    return %c0_i32, %c0_i32_0 : i32, i32
  }
}

</mosaic_0001>

<bundles_post_ra>
// kernel: vlm_forward_pallas.3
= control target key start
LH: loop header
LB: loop body
LE: loop exit
PB: predicated region body
PF: predicated region fallthrough
CT: control target
= control target key end

     0   :  { %s224_s9 = smov 0   ;;  %s253_s0 = inlined_call_operand.vmem [shape: f32[8,256], index: 0, kind: input, shape index: {}, may-alias: {0,2}]   ;;  %s254_s1 = inlined_call_operand.vmem [shape: f32[8,1], index: 1, kind: input, shape index: {}]   ;;  %s255_s2 = inlined_call_operand.vmem [shape: f32[8,256], index: 2, kind: output, shape index: {}, may-alias: {0,2}]  }
   0x1 LB: > { %s201_s10 = sadd.s32 4294967295, %s226_s9   ;;  %p205_p0 = scmp.ge.s32.totalorder %s226_s9, 1  ;;  %s226_s9 = sphi %s224_s9, %s12_s9  }
   0x2   : > { %p111_p1 = scmp.lt.s32.totalorder %s226_s9, 3 }
   0x4   : > { %p112_p2 = pnand %p205_p0, %p111_p1 }
   0x5   : > { %p131_p3 = scmp.lt.s32.totalorder (!%p112_p2), %s201_s10, 1 }
   0x6   : > { %115 = sbr.rel (%p112_p2) target bundleno = 131 (0x83), region = 28 }
   0xb   : > { %v140_v0 = vld [vmem:[%s254_s1] sm:$0xff]  ;;  %v228_v1 = vmov 0   ;;  %s257_s10 = smov (!%p131_p3, %s201_s10), 1 }
   0xc   : > { %219 = vset.pattern.permute.xlu0 %v228_v1  ;;  %s206_s13 = sshll.u32 %s257_s10, 3 }
   0xd   : > { %143 = vperm.xlu0 %219, %v140_v0   ;;  %s134_s16 = scalar_lea.vmem %s253_s0, %s206_s13  ;;  %s138_s19 = scalar_lea.vmem %s255_s2, %s206_s13 }
   0xe   : > { %v139_v2 = vld [vmem:[%s134_s16] sm:$0xff] }
  0x7f   : > { %v144_v3 = vpop.permute.xlu0 %143 }
  0x80   : > { %v146_v4 = vsub.f32 %v139_v2, %v144_v3 }
  0x82   : > { %147 = vst [vmem:[%s138_s19] sm:$0xff] %v146_v4 }
  0x83 PF: > { %s12_s9 = sadd.s32 1, %s226_s9  }
  0x84   : > { %p9_p4 = scmp.ge.s32.totalorder %s12_s9, 4  }
  0x86   :  { %11 = sbr.rel (!%p9_p4) target bundleno = 1 (0x1), region = 58 }

// kernel: vlm_forward_pallas.2
= control target key start
LH: loop header
LB: loop body
LE: loop exit
PB: predicated region body
PF: predicated region fallthrough
CT: control target
= control target key end

     0   :  { %s477_s12 = smov 0   ;;  %s533_s0 = inlined_call_operand.vmem [shape: bf16[8,32], index: 0, kind: input, shape index: {}]   ;;  %s534_s1 = inlined_call_operand.vmem [shape: bf16[256,32], index: 1, kind: input, shape index: {}]   ;;  %s535_s2 = inlined_call_operand.vmem [shape: f32[8,256], index: 2, kind: output, shape index: {0}]   ;;  %s536_s3 = inlined_call_operand.vmem [shape: f32[8,1], index: 3, kind: output, shape index: {1}]  }
   0x1 LB: > { %s483_s13 = sadd.s32 4294967295, %s452_s12   ;;  %p378_p0 = scmp.ge.s32.totalorder %s452_s12, 1  ;;  %s452_s12 = sphi %s477_s12, %s14_s12  }
   0x2   : > { %p136_p1 = scmp.lt.s32.totalorder %s452_s12, 3 }
   0x4   : > { %p137_p2 = pnand %p378_p0, %p136_p1 }
   0x5   : > { %s379_s14 = sshll.u32 (!%p137_p2), %s483_s13, 4  ;;  %p165_p3 = scmp.lt.s32.totalorder (!%p137_p2), %s483_s13, 1 }
   0x6   : > { %140 = sbr.rel (%p137_p2) target bundleno = 594 (0x252), region = 28  ;;  %p160_p4 = scmp.lt.s32.totalorder (!%p137_p2), %s379_s14, 31 }
   0x7   : > { %p382_p5 = scmp.ne.s32.totalorder (!%p137_p2), %s483_s13, 0 }
   0xb   : > { %s166_s15 = scalar_select %p165_p3, %s483_s13, 1 }
   0xc   : > { %s538_s14 = smov (!%p160_p4, %s379_s14), 31  ;;  %172 = sbr.rel (%p382_p5) target bundleno = 20 (0x14), region = 32 }
   0xd   : > { %s381_s16 = sshll.u32 %s166_s15, 3  ;;  %s380_s17 = sshll.u32 %s538_s14, 2 }
   0xe   : > { %s493_s20 = scalar_lea.vmem %s535_s2, %s381_s16  ;;  %s498_s23 = scalar_lea.vmem %s534_s1, %s380_s17 }
  0x11   : > { %vm173_vm0 = vcmask 7168   ;;  %v454_v0 = vmov -inf   ;;  %v455_v1 = vmov 0.0  }
  0x12   : > { %174 = vst.msk [vmem:[#allocation2] sm:$0xff] %vm173_vm0, %v454_v0 }
  0x13   : > { %175 = vst.msk [vmem:[#allocation3] sm:$0xff] %vm173_vm0, %v455_v1 }
  0x14 PF: > { %v427_v2 = vld [vmem:[%s498_s23 + $0x38] sm:$0xff]  ;;  %vm233_vm1 = vcmask 261120   ;;  %v426_v4 = vld [vmem:[%s498_s23 + $0x30] sm:$0xff]  ;;  %v425_v6 = vld [vmem:[%s498_s23 + $0x28] sm:$0xff]  ;;  %v275_v19 = vlaneseq  ;;  %s416_s26 = sshll.u32 %s483_s13, 7  ;;  %v456_v26 = vmov 0  }
  0x15   : > { %v259_v3 = vsel %vm233_vm1, %v427_v2, 0  ;;  %v256_v5 = vsel %vm233_vm1, %v426_v4, 0  ;;  %v253_v7 = vsel %vm233_vm1, %v425_v6, 0  ;;  %v424_v8 = vld [vmem:[%s498_s23 + $0x20] sm:$0xff]  ;;  %v423_v10 = vld [vmem:[%s498_s23 + $0x18] sm:$0xff]  ;;  %v422_v12 = vld [vmem:[%s498_s23 + $0x10] sm:$0xff]  ;;  %v277_v21 = vstv %s416_s26  ;;  %439 = vset.pattern.permute.xlu0 %v456_v26 }
  0x16   : > { %261 = vmatpush.bf16.xpose.msra.mxu0 %v259_v3  ;;  %v250_v9 = vsel %vm233_vm1, %v424_v8, 0  ;;  %v247_v11 = vsel %vm233_vm1, %v423_v10, 0  ;;  %v244_v13 = vsel %vm233_vm1, %v422_v12, 0  ;;  %v421_v14 = vld [vmem:[%s498_s23 + $0x8] sm:$0xff]  ;;  %v420_v16 = vld [vmem:[%s498_s23] sm:$0xff]  ;;  %v276_v20 = vand.u32 127, %v275_v19 }
  0x17   : > { %v241_v15 = vsel %vm233_vm1, %v421_v14, 0  ;;  %v238_v17 = vsel %vm233_vm1, %v420_v16, 0  ;;  %v176_v18 = vld [vmem:[%s533_s0] sm:$0xf]  ;;  %vm301_vm3 = vcmask 7168   ;;  %p417_p6 = scmp.ne.s32.totalorder %s483_s13, 1 }
  0x18   : > { %v278_v22 = vadd.s32 %v277_v21, %v276_v20 }
  0x19   : > { %v281_v27 = vld [vmem:[#allocation2] sm:$0xff] }
  0x1a   : > { %vm279_vm2 = vcmp.lt.s32.totalorder %v278_v22, 200  ;;  %v288_v37 = vld [vmem:[#allocation3] sm:$0xff] }
  0x1e   : > { %262 = vmatpush.bf16.xpose.msra.mxu0 %v256_v5 }
  0x26   : > { %263 = vmatpush.bf16.xpose.msra.mxu0 %v253_v7 }
  0x2e   : > { %264 = vmatpush.bf16.xpose.msra.mxu0 %v250_v9 }
  0x36   : > { %265 = vmatpush.bf16.xpose.msra.mxu0 %v247_v11 }
  0x3e   : > { %266 = vmatpush.bf16.xpose.msra.mxu0 %v244_v13 }
  0x46   : > { %267 = vmatpush.bf16.xpose.msra.mxu0 %v241_v15 }
  0x4e   : > { %268 = vmatpush.bf16.xpose.msra.mxu0 %v238_v17 }
  0x55   : > { %415 = vmatmul.msk.bf16.vlgmr.msra.gmra.mxu0 %vm233_vm1, %v176_v18 }
  0xd2   : > { %v270_v23 = vpop.f32.mrf.mxu0 }
  0xd3   : > { %v280_v24 = vsel %vm279_vm2, %v270_v23, -inf }
  0xd4   : > { %304 = vst [vmem:[%s493_s20] sm:$0xff] %v280_v24  ;;  %282 = vmax.xlane.f32.xlu0 %v280_v24 }
  0xda   : > { %v272_v25 = vpop.f32.mrf.mxu0 }
 0x147   : > { %v283_v28 = vpop.xlane.xlu0 %282 }
 0x148   : > { %v284_v29 = vmax.f32 %v281_v27, %v283_v28 }
 0x14a   : > { %v285_v30 = vsub.f32 %v281_v27, %v284_v29  ;;  %303 = vst.msk [vmem:[#allocation2] sm:$0xff] %vm301_vm3, %v284_v29  ;;  %292 = vperm.xlu0 %439, %v284_v29  }
 0x14c   : > { %v286_v35 = vmul.f32 1.442695, %v285_v30 }
 0x1bc   : > { %v293_v31 = vpop.permute.xlu0 %292 }
 0x1bd   : > { %v295_v32 = vsub.f32 %v280_v24, %v293_v31 }
 0x1bf   : > { %v296_v33 = vmul.f32 1.442695, %v295_v32 }
 0x1c1   : > { %440 = vpow2.f32 %v296_v33 }
 0x1c2   : > { %442 = vpow2.f32 %v286_v35 }
 0x1c7   : > { %v441_v34 = vpop.eup %440 }
 0x1c8   : > { %298 = vadd.xlane.f32.xlu1 %v441_v34  ;;  %v443_v36 = vpop.eup %442 }
 0x1c9   : > { %v289_v38 = vmul.f32 %v443_v36, %v288_v37 }
 0x23a   : > { %308 = sbr.rel (%p417_p6) target bundleno = 594 (0x252), region = 36 }
 0x23b   : > { %v299_v39 = vpop.xlane.xlu1 %298 }
 0x23c   : > { %v300_v40 = vadd.f32 %v299_v39, %v289_v38 }
 0x23e   : > { %302 = vst.msk [vmem:[#allocation3] sm:$0xff] %vm301_vm3, %v300_v40 }
 0x23f   : > { %v309_v43 = vld [vmem:[#allocation2] sm:$0xff] }
 0x245   : > { %v310_v41 = vld [vmem:[#allocation3] sm:$0xff] }
 0x246   : > { %444 = vlog2.f32 %v310_v41 }
 0x24c   : > { %v445_v42 = vpop.eup %444 }
 0x24d   : > { %v312_v44 = vmul.f32 0.6931472, %v445_v42 }
 0x24f   : > { %v313_v45 = vadd.f32 %v312_v44, %v309_v43 }
 0x251   : > { %314 = vst.msk [vmem:[%s536_s3] sm:$0xff] %vm301_vm3, %v313_v45 }
 0x252 PF: > { %s14_s12 = sadd.s32 1, %s452_s12  }
 0x253   : > { %p11_p7 = scmp.ge.s32.totalorder %s14_s12, 4  }
 0x255   :  { %13 = sbr.rel (!%p11_p7) target bundleno = 1 (0x1), region = 74 }

</bundles_post_ra>
